<compile_context>
chip_gen: v5e
topology: v5e:2x2
jax: 0.10.0
libtpu: 0.0.40
codegen_flags: <defaults>
</compile_context>

<pallas_src>
import jax
import jax.numpy as jnp
from jax.experimental import pallas as pl
from jax.experimental.pallas import tpu as pltpu


def conv_im2col_kernel(p_ref, w_ref, b_ref, o_ref):
    # p_ref: (1, K, M)     im2col patches for one image (K = Cin*KH*KW, M = Ho*Wo)
    # w_ref: (Cout, K)     flattened weights; same block every grid step (resident)
    # b_ref: (Cout, 1)
    # o_ref: (1, Cout, M)  flattened-NCHW output tile (lane dim = M)
    acc = jnp.dot(w_ref[...], p_ref[0], preferred_element_type=jnp.float32)
    o_ref[0] = (acc + b_ref[...]).astype(o_ref.dtype)


def tudui_forward(x_nchw, w_oihw, bias):
    """Conv2d(3, 64, kernel_size=3, stride=1, padding=0) — PyTorch semantics."""
    N, Cin, H, W = x_nchw.shape
    Cout, _, KH, KW = w_oihw.shape
    Ho, Wo = H - KH + 1, W - KW + 1
    K = Cin * KH * KW          # 27
    M = Ho * Wo                # 196

    # --- im2col in the wrapper (tiny; XLA handles layout) -------------------
    # patches[n, c*KH*KW + kh*KW + kw, ho*Wo + wo] = x[n, c, ho+kh, wo+kw]
    cols = [x_nchw[:, :, kh:kh + Ho, kw:kw + Wo]
            for kh in range(KH) for kw in range(KW)]            # each (N,Cin,Ho,Wo)
    patches = jnp.stack(cols, axis=2).reshape(N, K, M)          # (N, 27, 196)

    # Weight flattens with the same (cin, kh, kw) ordering -> plain reshape.
    w_flat = w_oihw.reshape(Cout, K)
    b2 = bias.reshape(Cout, 1)

    out_flat = pl.pallas_call(
        conv_im2col_kernel,
        out_shape=jax.ShapeDtypeStruct((N, Cout, M), x_nchw.dtype),
        grid=(N,),
        in_specs=[
            pl.BlockSpec((1, K, M), lambda n: (n, 0, 0)),
            pl.BlockSpec((Cout, K), lambda n: (0, 0)),
            pl.BlockSpec((Cout, 1), lambda n: (0, 0)),
        ],
        out_specs=pl.BlockSpec((1, Cout, M), lambda n: (n, 0, 0)),
        compiler_params=pltpu.CompilerParams(
            dimension_semantics=("parallel",)),
    )(patches, w_flat, b2)

    # (N, Cout, Ho*Wo) is already flattened NCHW — reshape only, no transpose.
    return out_flat.reshape(N, Cout, Ho, Wo)


if __name__ == "__main__":
    key = jax.random.PRNGKey(0)
    kx, kw, kb = jax.random.split(key, 3)

    N, Cin, H, W = 2, 3, 16, 16
    Cout, KH, KW = 64, 3, 3

    x = jax.random.normal(kx, (N, Cin, H, W), dtype=jnp.float32)

    # Deterministic init matching PyTorch Conv2d default (uniform +-1/sqrt(fan_in)).
    fan_in = Cin * KH * KW
    bound = 1.0 / (fan_in ** 0.5)
    w = jax.random.uniform(kw, (Cout, Cin, KH, KW), jnp.float32, -bound, bound)
    b = jax.random.uniform(kb, (Cout,), jnp.float32, -bound, bound)

    out = jax.block_until_ready(tudui_forward(x, w, b))
    assert out.shape == (N, Cout, H - KH + 1, W - KW + 1), out.shape

    # Pure-JAX reference check.
    ref = jax.lax.conv_general_dilated(
        x, w, window_strides=(1, 1), padding="VALID",
        dimension_numbers=("NCHW", "OIHW", "NCHW"),
    ) + b[None, :, None, None]
    assert jnp.allclose(out, ref, atol=1e-4, rtol=1e-4)

    print("KERNEL_OK")
</pallas_src>

<mosaic_0001>
module attributes {stable_mosaic.version = 11 : i64} {
  func.func @conv_im2col_kernel(%arg0: i32, %arg1: memref<1x27x196xf32, #tpu.memory_space<vmem>>, %arg2: memref<64x27xf32, #tpu.memory_space<vmem>>, %arg3: memref<64x1xf32, #tpu.memory_space<vmem>>, %arg4: memref<1x64x196xf32, #tpu.memory_space<vmem>>) attributes {dimension_semantics = [#tpu.dimension_semantics<parallel>], iteration_bounds = array<i64: 2>, scalar_prefetch = 0 : i64, scratch_operands = 0 : i64, tpu.core_type = #tpu.core_type<tc>, window_params = [{transform_indices = @transform_0, window_bounds = array<i64: 1, 27, 196>}, {pipeline_mode = #tpu.pipeline_mode<synchronous>, transform_indices = @transform_1, window_bounds = array<i64: 64, 27>}, {pipeline_mode = #tpu.pipeline_mode<synchronous>, transform_indices = @transform_2, window_bounds = array<i64: 64, 1>}, {transform_indices = @transform_3, window_bounds = array<i64: 1, 64, 196>}]} {
    %c0 = arith.constant 0 : index
    %c0_0 = arith.constant 0 : index
    %0 = vector.load %arg2[%c0, %c0_0] : memref<64x27xf32, #tpu.memory_space<vmem>>, vector<64x27xf32>
    %c0_1 = arith.constant 0 : index
    %c0_2 = arith.constant 0 : index
    %c0_3 = arith.constant 0 : index
    %1 = vector.load %arg1[%c0_1, %c0_2, %c0_3] : memref<1x27x196xf32, #tpu.memory_space<vmem>>, vector<1x27x196xf32>
    %2 = vector.shape_cast %1 : vector<1x27x196xf32> to vector<27x196xf32>
    %cst = arith.constant dense<0.000000e+00> : vector<64x196xf32>
    %3 = tpu.matmul %0, %2, %cst {dimension_numbers = #tpu.dot_dimension_numbers<[1], [0], [0], [1], [0, 0, 1, 1], [], []>} : vector<64x27xf32>, vector<27x196xf32>, vector<64x196xf32> -> vector<64x196xf32>
    %c0_4 = arith.constant 0 : index
    %c0_5 = arith.constant 0 : index
    %4 = vector.load %arg3[%c0_4, %c0_5] : memref<64x1xf32, #tpu.memory_space<vmem>>, vector<64x1xf32>
    %5 = vector.broadcast %4 : vector<64x1xf32> to vector<64x196xf32>
    %6 = arith.addf %3, %5 : vector<64x196xf32>
    %c0_6 = arith.constant 0 : index
    %c0_7 = arith.constant 0 : index
    %c0_8 = arith.constant 0 : index
    %7 = vector.load %arg4[%c0_6, %c0_7, %c0_8] : memref<1x64x196xf32, #tpu.memory_space<vmem>>, vector<1x64x196xf32>
    %8 = vector.shape_cast %7 : vector<1x64x196xf32> to vector<64x196xf32>
    %9 = vector.shape_cast %6 : vector<64x196xf32> to vector<1x64x196xf32>
    tpu.vector_store %arg4[%c0_6, %c0_7, %c0_8], %9 {strides = array<i32>} : memref<1x64x196xf32, #tpu.memory_space<vmem>>, vector<1x64x196xf32>,
    return
  }
  func.func @transform_0(%arg0: i32) -> (i32, i32, i32) {
    %c0_i32 = arith.constant 0 : i32
    %c0_i32_0 = arith.constant 0 : i32
    %c0_i32_1 = arith.constant 0 : i32
    return %arg0, %c0_i32, %c0_i32_0 : i32, i32, i32
  }
  func.func @transform_1(%arg0: i32) -> (i32, i32) {
    %c0_i32 = arith.constant 0 : i32
    %c0_i32_0 = arith.constant 0 : i32
    %c0_i32_1 = arith.constant 0 : i32
    return %c0_i32, %c0_i32_0 : i32, i32
  }
  func.func @transform_2(%arg0: i32) -> (i32, i32) {
    %c0_i32 = arith.constant 0 : i32
    %c0_i32_0 = arith.constant 0 : i32
    %c0_i32_1 = arith.constant 0 : i32
    return %c0_i32, %c0_i32_0 : i32, i32
  }
  func.func @transform_3(%arg0: i32) -> (i32, i32, i32) {
    %c0_i32 = arith.constant 0 : i32
    %c0_i32_0 = arith.constant 0 : i32
    %c0_i32_1 = arith.constant 0 : i32
    return %arg0, %c0_i32, %c0_i32_0 : i32, i32, i32
  }
}

</mosaic_0001>

<bundles_post_ra>
// kernel: tpu_custom_call.1
= control target key start
LH: loop header
LB: loop body
LE: loop exit
PB: predicated region body
PF: predicated region fallthrough
CT: control target
= control target key end

     0   :  { %8 = vsyncpa [#allocation3], 0  ;;  %s794_s0 = inlined_call_operand.vmem [shape: f32[2,27,196], index: 0, kind: input, shape index: {}]   ;;  %s795_s1 = inlined_call_operand.vmem [shape: f32[64,27], index: 1, kind: input, shape index: {}]   ;;  %s796_s2 = inlined_call_operand.vmem [shape: f32[64,1], index: 2, kind: input, shape index: {}]   ;;  %s797_s3 = inlined_call_operand.hbm [shape: f32[2,64,196], index: 3, kind: output, shape index: {}]  }
   0x1   :  { %10 = vsyncpa [#allocation3 + $0x1], 0  ;;  %s614_s12 = smov 0   ;;  %s616_s13 = smov 0  }
   0x2   :  { %s618_s14 = smov 0   ;;  %s620_s15 = smov 0  }
   0x3 LB: > { %s635_s16 = sadd.s32 4294967295, %s589_s15   ;;  %s442_s17 = sadd.s32 4294967294, %s589_s15   ;;  %s589_s15 = sphi %s620_s15, %s803_s15   ;;  %s585_s14 = sphi %s618_s14, %s802_s14   ;;  %s581_s13 = sphi %s616_s13, %s801_s13   ;;  %s577_s12 = sphi %s614_s12, %s800_s12  }
   0x4   : > { %s639_s18 = sadd.s32 1, %s589_s15   ;;  %s91_s19 = sadd.s32 1, %s585_s14 }
   0x5   : > { %s88_s20 = ssub.s32 %s589_s15, %s639_s18  ;;  %p101_p0 = scmp.ne.s32.totalorder %s585_s14, %s581_s13 }
   0x6   : > { %p89_p1 = scmp.eq.s32.totalorder %s88_s20, 0  ;;  %p102_p2 = scmp.eq.s32.totalorder %s635_s16, 1 }
   0x7   : > { %p107_p3 = scmp.ne.s32.totalorder %s581_s13, %s577_s12  ;;  %p108_p4 = scmp.eq.s32.totalorder %s442_s17, 1 }
   0x8   : > { %s650_s21 = scalar_select %p89_p1, %s585_s14, %s91_s19  }
   0x9   : > { %p652_p5 = por %p102_p2, %p101_p0  ;;  %p656_p6 = por %p108_p4, %p107_p3 }
   0xa   : > { %p445_p7 = scmp.ge.s32.totalorder %s589_s15, 1  ;;  %p140_p8 = scmp.lt.s32.totalorder %s589_s15, 3 }
   0xc   : > { %p141_p9 = pnand %p445_p7, %p140_p8 }
   0xd   : > { %p164_p10 = scmp.lt.s32.totalorder (!%p141_p9), %s635_s16, 1  ;;  %s161_s25 = sand.u32 (!%p141_p9), 1, %s581_s13  }
   0xe   : > { %144 = sbr.rel (%p141_p9) target bundleno = 195 (0xc3), region = 32  ;;  %s473_s28 = sshll.u32 (!%p141_p9), %s635_s16, 7 }
   0xf   : > { %s376_s4 = scalar_lea.hbm (!%p141_p9), %s797_s3, %s473_s28  ;;  %s365_s6 = scalar_lea.sflag (!%p141_p9), [#allocation3], %s161_s25 }
  0x10   : > { %s547_s11 = scalar_lea.hbm (!%p141_p9), %s797_s3, 256 }
  0x13   : > { %v591_v0 = vmov 0   ;;  %v187_v1 = vld [vmem:[%s796_s2 + $0x10] sm:$0xff]  ;;  %s165_s26 = scalar_select %p164_p10, %s635_s16, 1  ;;  %v185_v2 = vld [vmem:[%s796_s2] sm:$0xff]  ;;  %vm258_vm0 = vcmask 1042432   ;;  %vm233_vm1 = vcmask 220160  }
  0x14   : > { %525 = vset.pattern.permute.xlu1 %v591_v0  ;;  %524 = vset.pattern.permute.xlu0 %v591_v0  ;;  %v169_v11 = vld [vmem:[%s795_s1] sm:$0xff]  ;;  %v188_v13 = vld [vmem:[%s796_s2 + $0x18] sm:$0xff]  ;;  %v186_v14 = vld [vmem:[%s796_s2 + $0x8] sm:$0xff]  ;;  %vm348_vm2 = vcmask 556032  }
  0x15   : > { %205 = vperm.xlu1 %525, %v187_v1   ;;  %526 = vset.pattern.permute.xlu2 %v591_v0  ;;  %s472_s29 = sshll.u32 %s165_s26, 6  ;;  %v173_v12 = vld [vmem:[%s795_s1 + $0x20] sm:$0xff]  ;;  %v170_v16 = vld [vmem:[%s795_s1 + $0x8] sm:$0xff]  ;;  %v192_v18 = vld [vmem:[%s796_s2 + $0x38] sm:$0xff]  ;;  %s446_s26 = sshll.u32 %s161_s25, 7 }
  0x16   : > { %195 = vperm.xlu0 %524, %v185_v2   ;;  %s168_s5 = scalar_lea.vmem %s794_s0, %s472_s29  ;;  %v189_v15 = vld [vmem:[%s796_s2 + $0x20] sm:$0xff]  ;;  %v174_v17 = vld [vmem:[%s795_s1 + $0x28] sm:$0xff]  ;;  %v191_v19 = vld [vmem:[%s796_s2 + $0x30] sm:$0xff]  ;;  %s734_s27 = scalar_lea.vmem [#allocation2], %s446_s26 }
  0x17   : > { %v183_v3 = vld [vmem:[%s168_s5 + $0x30] sm:$0x7]  ;;  %v184_v4 = vld [vmem:[%s168_s5 + $0x38] sm:$0x7]  ;;  %v181_v5 = vld [vmem:[%s168_s5 + $0x20] sm:$0xff]  ;;  %215 = vperm.xlu2 %526, %v189_v15   ;;  %s377_s16 = sshll.u32 %s734_s27, 4  ;;  %s378_s16 = int_to_ptr.vmem [resolvable:$true] %s377_s16 }
  0x18   : > { %449 = vmatpush.msk.msra.mxu0 %vm258_vm0, %v183_v3  ;;  %474 = vmatpush.msk.msra.mxu2 %vm258_vm0, %v183_v3  ;;  %v182_v6 = vld [vmem:[%s168_s5 + $0x28] sm:$0xff]  ;;  %v179_v7 = vld [vmem:[%s168_s5 + $0x10] sm:$0xff]  ;;  %v180_v8 = vld [vmem:[%s168_s5 + $0x18] sm:$0xff] }
  0x19   : > { %458 = vmatpush.msk.msra.mxu1 %vm258_vm0, %v184_v4  ;;  %478 = vmatpush.msk.msra.mxu3 %vm258_vm0, %v184_v4  ;;  %v177_v9 = vld [vmem:[%s168_s5] sm:$0xff]  ;;  %v178_v10 = vld [vmem:[%s168_s5 + $0x8] sm:$0xff]  ;;  %v171_v21 = vld [vmem:[%s795_s1 + $0x10] sm:$0xff]  ;;  %s379_s5 = sshll.u32 %s376_s4, 4  ;;  %s380_s5 = int_to_ptr.hbm [resolvable:$true] %s379_s5 }
  0x1a   : > { %278 = vmatpush.msra.mxu0 %v181_v5  ;;  %475 = vmatpush.msra.mxu2 %v181_v5  ;;  %v190_v20 = vld [vmem:[%s796_s2 + $0x28] sm:$0xff]  ;;  %v175_v22 = vld [vmem:[%s795_s1 + $0x30] sm:$0xff]  ;;  %v172_v23 = vld [vmem:[%s795_s1 + $0x18] sm:$0xff]  ;;  %s541_s7 = sshra.s32 %s380_s5, 4  ;;  %s542_s7 = int_to_ptr.hbm [resolvable:$true] %s541_s7 }
  0x1b   : > { %319 = vmatpush.msra.mxu1 %v182_v6  ;;  %479 = vmatpush.msra.mxu3 %v182_v6  ;;  %v176_v24 = vld [vmem:[%s795_s1 + $0x38] sm:$0xff]  ;;  %s543_s8 = scalar_lea.hbm %s542_s7, 128  ;;  %p548_p0 = scmp.lt.s32.totalorder %s542_s7, %s797_s3 }
  0x1c   : > { %279 = vmatpush.msra.mxu0 %v179_v7  ;;  %476 = vmatpush.msra.mxu2 %v179_v7  ;;  %p544_p11 = scmp.ne.s32.totalorder %s542_s7, %s543_s8  ;;  %p549_p1 = scmp.lt.s32.totalorder %s547_s11, %s543_s8 }
  0x1d   : > { %320 = vmatpush.msra.mxu1 %v180_v8  ;;  %480 = vmatpush.msra.mxu3 %v180_v8 }
  0x1e   : > { %280 = vmatpush.msra.mxu0 %v177_v9  ;;  %477 = vmatpush.msra.mxu2 %v177_v9  ;;  %p545_p12 = pnand %p544_p11, %p652_p5  ;;  %p550_p2 = por %p549_p1, %p548_p0 }
  0x1f   : > { %321 = vmatpush.msra.mxu1 %v178_v10  ;;  %481 = vmatpush.msra.mxu3 %v178_v10 }
  0x20   : > { %450 = vmatmul.msk.f32.vlgmr.msra.gmra.mxu0 %vm233_vm1, %v169_v11  ;;  %454 = vmatmul.msk.f32.vlgmr.msra.gmra.mxu2 %vm233_vm1, %v173_v12  ;;  %p546_p13 = pneg %p545_p12 }
  0x21   : > { %459 = vmatmul.msk.f32.vlgmr.msra.gmra.mxu1 %vm233_vm1, %v169_v11  ;;  %463 = vmatmul.msk.f32.vlgmr.msra.gmra.mxu3 %vm233_vm1, %v173_v12 }
  0x22   : > { %210 = vperm.xlu1 %525, %v188_v13   ;;  %200 = vperm.xlu0 %524, %v186_v14   ;;  %p551_p3 = pnand %p550_p2, %p546_p13 }
  0x23   : > { %220 = vperm.xlu2 %526, %v190_v20  }
  0x28   : > { %451 = vmatmul.msk.f32.gmra.mxu0 %vm233_vm1, %v170_v16  ;;  %455 = vmatmul.msk.f32.gmra.mxu2 %vm233_vm1, %v174_v17 }
  0x29   : > { %460 = vmatmul.msk.f32.gmra.mxu1 %vm233_vm1, %v170_v16  ;;  %464 = vmatmul.msk.f32.gmra.mxu3 %vm233_vm1, %v174_v17 }
  0x2a   : > { %230 = vperm.xlu1 %525, %v192_v18   ;;  %225 = vperm.xlu0 %524, %v191_v19  }
  0x30   : > { %452 = vmatmul.msk.f32.gmra.mxu0 %vm233_vm1, %v171_v21  ;;  %456 = vmatmul.msk.f32.gmra.mxu2 %vm233_vm1, %v175_v22 }
  0x31   : > { %461 = vmatmul.msk.f32.gmra.mxu1 %vm233_vm1, %v171_v21  ;;  %465 = vmatmul.msk.f32.gmra.mxu3 %vm233_vm1, %v175_v22 }
  0x38   : > { %453 = vmatmul.msk.f32.gmra.mxu0 %vm233_vm1, %v172_v23  ;;  %457 = vmatmul.msk.f32.gmra.mxu2 %vm233_vm1, %v176_v24 }
  0x39   : > { %462 = vmatmul.msk.f32.gmra.mxu1 %vm233_vm1, %v172_v23  ;;  %466 = vmatmul.msk.f32.gmra.mxu3 %vm233_vm1, %v176_v24 }
  0x71   : > { %v216_v30 = vpop.permute.xlu2 %215 }
  0x7d   : > { %v221_v41 = vpop.permute.xlu2 %220 }
  0x87   : > { %v206_v39 = vpop.permute.xlu1 %205 }
  0x88   : > { %v196_v25 = vpop.permute.xlu0 %195 }
  0x94   : > { %v201_v34 = vpop.permute.xlu0 %200  ;;  %v211_v50 = vpop.permute.xlu1 %210 }
  0x9c   : > { %v226_v51 = vpop.permute.xlu0 %225  ;;  %v231_v60 = vpop.permute.xlu1 %230 }
  0x9d   : > { %v282_v26 = vpop.f32.mrf.mxu0 }
  0x9e   : > { %v283_v27 = vadd.f32 %v282_v26, %v196_v25  ;;  %v323_v28 = vpop.f32.mrf.mxu1 }
  0x9f   : > { %v324_v29 = vadd.f32 %v323_v28, %v196_v25 }
  0xa0   : > { %347 = vst [vmem:[%s734_s27] sm:$0xff] %v283_v27 }
  0xa1   : > { %349 = vst.msk [vmem:[%s734_s27 + $0x8] sm:$0xff] %vm348_vm2, %v324_v29 }
  0xa3   : > { %v294_v31 = vpop.f32.mrf.mxu2 }
  0xa4   : > { %v295_v32 = vadd.f32 %v294_v31, %v216_v30  ;;  %v335_v33 = vpop.f32.mrf.mxu3 }
  0xa5   : > { %v336_v35 = vadd.f32 %v335_v33, %v216_v30  ;;  %v285_v36 = vpop.f32.mrf.mxu0 }
  0xa6   : > { %356 = vst [vmem:[%s734_s27 + $0x40] sm:$0xff] %v295_v32  ;;  %v286_v37 = vadd.f32 %v285_v36, %v201_v34  ;;  %v326_v38 = vpop.f32.mrf.mxu1 }
  0xa7   : > { %357 = vst.msk [vmem:[%s734_s27 + $0x48] sm:$0xff] %vm348_vm2, %v336_v35  ;;  %v327_v40 = vadd.f32 %v326_v38, %v201_v34 }
  0xa8   : > { %350 = vst [vmem:[%s734_s27 + $0x10] sm:$0xff] %v286_v37 }
  0xa9   : > { %351 = vst.msk [vmem:[%s734_s27 + $0x18] sm:$0xff] %vm348_vm2, %v327_v40 }
  0xab   : > { %v297_v42 = vpop.f32.mrf.mxu2 }
  0xac   : > { %v298_v43 = vadd.f32 %v297_v42, %v221_v41  ;;  %v338_v44 = vpop.f32.mrf.mxu3 }
  0xad   : > { %v339_v45 = vadd.f32 %v338_v44, %v221_v41  ;;  %v288_v46 = vpop.f32.mrf.mxu0 }
  0xae   : > { %358 = vst [vmem:[%s734_s27 + $0x50] sm:$0xff] %v298_v43  ;;  %v289_v47 = vadd.f32 %v288_v46, %v206_v39  ;;  %v329_v48 = vpop.f32.mrf.mxu1 }
  0xaf   : > { %359 = vst.msk [vmem:[%s734_s27 + $0x58] sm:$0xff] %vm348_vm2, %v339_v45  ;;  %v330_v49 = vadd.f32 %v329_v48, %v206_v39 }
  0xb0   : > { %352 = vst [vmem:[%s734_s27 + $0x20] sm:$0xff] %v289_v47 }
  0xb1   : > { %353 = vst.msk [vmem:[%s734_s27 + $0x28] sm:$0xff] %vm348_vm2, %v330_v49 }
  0xb3   : > { %v300_v52 = vpop.f32.mrf.mxu2 }
  0xb4   : > { %v301_v53 = vadd.f32 %v300_v52, %v226_v51  ;;  %v341_v54 = vpop.f32.mrf.mxu3 }
  0xb5   : > { %v342_v55 = vadd.f32 %v341_v54, %v226_v51  ;;  %v291_v56 = vpop.f32.mrf.mxu0 }
  0xb6   : > { %360 = vst [vmem:[%s734_s27 + $0x60] sm:$0xff] %v301_v53  ;;  %v292_v57 = vadd.f32 %v291_v56, %v211_v50  ;;  %v332_v58 = vpop.f32.mrf.mxu1 }
  0xb7   : > { %361 = vst.msk [vmem:[%s734_s27 + $0x68] sm:$0xff] %vm348_vm2, %v342_v55  ;;  %v333_v59 = vadd.f32 %v332_v58, %v211_v50 }
  0xb8   : > { %354 = vst [vmem:[%s734_s27 + $0x30] sm:$0xff] %v292_v57 }
  0xb9   : > { %355 = vst.msk [vmem:[%s734_s27 + $0x38] sm:$0xff] %vm348_vm2, %v333_v59 }
  0xbb   : > { %v303_v61 = vpop.f32.mrf.mxu2 }
  0xbc   : > { %v304_v62 = vadd.f32 %v303_v61, %v231_v60  ;;  %v344_v63 = vpop.f32.mrf.mxu3 }
  0xbd   : > { %v345_v0 = vadd.f32 %v344_v63, %v231_v60 }
  0xbe   : > { %362 = vst [vmem:[%s734_s27 + $0x70] sm:$0xff] %v304_v62 }
  0xbf   : > { %363 = vst.msk [vmem:[%s734_s27 + $0x78] sm:$0xff] %vm348_vm2, %v345_v0 }
  0xc0   : > { %554 = shalt.err (!%p551_p3)
}
  0xc1   : > { %s592_s20 = smov 256   ;;  %s593_s24 = smov 16  }
  0xc2   : > { %482 = dma.vmem_to_hbm [thread:$0]  (%p652_p5), %s378_s16, 2048, %s380_s5, %s365_s6, %s592_s20, %s592_s20, %s593_s24  }
  0xc3 PF: > { %p488_p4 = scmp.ge.s32.totalorder %s589_s15, 2  ;;  %s394_s25 = sand.u32 1, %s577_s12  }
  0xc4   : > { %s395_s26 = scalar_lea.sflag [#allocation3], %s394_s25 }
  0xc5   : > { %p485_p7 = pnand %p488_p4, %p656_p6 }
  0xc7   : > { %p486_p8 = pneg %p485_p7 }
  0xc9   : > { %572 = dma.done.wait (%p486_p8), %s395_s26, 2048  }
  0xca   : > { %574 = vsyncadd (%p486_p8), %s395_s26, 4294965248  ;;  %p13_p9 = scmp.ge.s32.totalorder %s639_s18, 4   ;;  %s800_s12 = smov %s581_s13 }
  0xcb   : > { %s801_s13 = smov %s585_s14  ;;  %s802_s14 = smov %s650_s21 }
  0xcc   : > { %s803_s15 = smov %s639_s18  ;;  %15 = sbr.rel (!%p13_p9) target bundleno = 3 (0x3), region = 67 }
  0xd1   :  { %401 = vsyncpa [#allocation3], 1 }
  0xd2   :  { %403 = vsyncpa [#allocation3 + $0x1], 1 }

</bundles_post_ra>
